<compile_context>
chip_gen: v5e
topology: v5e:2x2
jax: 0.10.0
libtpu: 0.0.40
codegen_flags: <defaults>
</compile_context>

<pallas_src>
import jax
import jax.numpy as jnp
from jax import lax
from jax.experimental import pallas as pl
from jax.experimental.pallas import tpu as pltpu


# ----------------------------- helpers ------------------------------------ #

def _round_up(a: int, b: int) -> int:
    return (a + b - 1) // b * b


def _pad2d(a, rows, cols):
    pr, pc = rows - a.shape[0], cols - a.shape[1]
    if pr == 0 and pc == 0:
        return a
    return jnp.pad(a, ((0, pr), (0, pc)))


def _vmem_limit_bytes() -> int:
    cap = 64 * 1024 * 1024                      # conservative default (v7x physical VMEM)
    try:
        cap = int(pltpu.get_tpu_info().vmem_capacity_bytes)
    except Exception:
        pass
    return int(cap * 3 // 4)                    # leave headroom below physical capacity


def _pick_tq(t_keys, d_h_p, d_out_p, itemsize, budget_bytes, tq_max=512):
    """Pick query-tile rows so the attention kernel's VMEM footprint fits."""
    # resident across the whole grid: K, V (constant block index) + Wo
    fixed = 2 * t_keys * d_h_p * itemsize + d_out_p * d_h_p * itemsize
    # per query row: score/exp/prob f32 temporaries, AP + attn tiles (double
    # buffered, f32), q tile (double buffered), y tile (double buffered, f32).
    per_row = (4 * t_keys * 4 + 2 * t_keys * 4 + 2 * t_keys * 4
               + 2 * d_h_p * itemsize + 2 * d_out_p * 4)
    tq = (budget_bytes - fixed) // max(per_row, 1)
    return int(max(8, min(tq_max, (tq // 8) * 8)))


def _absolute_position_encoding(T, freq, d):
    """AP[p, 2i] = sin(p / freq**(2i/d)), AP[p, 2i+1] = cos(...), i in [0, T//2)."""
    ap = jnp.zeros((T, T), jnp.float32)
    n = T // 2
    if n == 0:
        return ap
    pos = jnp.arange(T, dtype=jnp.float32)[:, None]
    i = jnp.arange(n, dtype=jnp.float32)[None, :]
    ang = pos / (freq ** (2.0 * i / d))
    ap = ap.at[:, 0:2 * n:2].set(jnp.sin(ang))
    ap = ap.at[:, 1:2 * n:2].set(jnp.cos(ang))
    return ap


# ----------------------------- kernels ------------------------------------ #

def _qkv_proj_kernel(x_ref, w_ref, qkv_ref):
    # Fused Q/K/V projection: one MXU pass with N = 3*D_h.  The weight
    # transpose is folded into dot_general dimension_numbers (contract on
    # in_features of both operands).
    qkv_ref[...] = lax.dot_general(
        x_ref[...], w_ref[...], (((1,), (1,)), ((), ())),
        preferred_element_type=jnp.float32).astype(qkv_ref.dtype)


def _attention_kernel(q_ref, k_ref, v_ref, ap_ref, wo_ref, y_ref, attn_ref):
    # Scores for this query tile against all keys: (tq, T_pad).
    s = lax.dot_general(q_ref[...], k_ref[...], (((1,), (1,)), ((), ())),
                        preferred_element_type=jnp.float32)
    # Precomputed absolute positional encoding (also carries the -1e30 mask for
    # padded key columns).  Hoisting it removes all T^2 sin/cos from the EUP.
    s = s + ap_ref[...]

    # Numerically stable softmax over keys; one reciprocal per row instead of a
    # per-element divide.
    m = jnp.max(s, axis=-1, keepdims=True)
    e = jnp.exp(s - m)
    denom = jnp.sum(e, axis=-1, keepdims=True)
    p = e * pl.reciprocal(denom, approx=False)
    attn_ref[...] = p

    # TODO(synk): nn.Dropout(p=0.5) is an eval-mode no-op and is omitted here.

    y = jnp.dot(p.astype(v_ref.dtype), v_ref[...],
                preferred_element_type=jnp.float32)
    # Output projection, transpose folded into dot_general (y @ Wo^T).
    y_ref[...] = lax.dot_general(
        y.astype(wo_ref.dtype), wo_ref[...], (((1,), (1,)), ((), ())),
        preferred_element_type=jnp.float32).astype(y_ref.dtype)


# ----------------------------- wrapper ------------------------------------ #

def self_attention(x, wq, wk, wv, wo, *, freq=10000.0, d_pos=1024.0,
                   compute_dtype=jnp.float32, tq_max=512):
    """Forward pass of SelfAttention (heads=1, eval mode).

    x : (T, D_in); wq/wk/wv : (D_h, D_in); wo : (D_out, D_h)  [PyTorch layouts].
    Returns (y: (T, D_out) float32, attn: (T, T) float32).
    """
    T, d_in = x.shape
    d_h = wq.shape[0]
    d_out, d_h_o = wo.shape
    assert d_h_o == d_h, "single-head kernel: wo in_features must equal D_h"

    compute_dtype = jnp.dtype(compute_dtype)
    itemsize = compute_dtype.itemsize

    # Lane-dense padding: feature dims -> multiples of 128 (MXU fill, unmasked
    # stores).  Zero padding preserves the math exactly.
    d_in_p = _round_up(d_in, 128)
    d_h_p = _round_up(d_h, 128)
    d_out_p = _round_up(d_out, 128)

    vmem_limit = _vmem_limit_bytes()
    t8 = _round_up(T, 8)
    tq = min(_pick_tq(t8, d_h_p, d_out_p, itemsize,
                      int(vmem_limit * 0.6), tq_max), t8)
    t_pad = _round_up(T, tq)
    n_row = t_pad // tq

    x_p = _pad2d(x, t_pad, d_in_p).astype(compute_dtype)
    w_qkv = jnp.concatenate(
        [_pad2d(wq, d_h_p, d_in_p), _pad2d(wk, d_h_p, d_in_p),
         _pad2d(wv, d_h_p, d_in_p)], axis=0).astype(compute_dtype)
    wo_p = _pad2d(wo, d_out_p, d_h_p).astype(compute_dtype)

    # AP is input-independent: precompute once (hoists T^2 transcendentals out
    # of the kernel) and bake a -1e30 key-padding mask into the padded columns.
    ap = _absolute_position_encoding(T, freq, d_pos)
    ap_p = jnp.pad(ap, ((0, t_pad - T), (0, t_pad - T)))
    if t_pad > T:
        ap_p = jnp.where(jnp.arange(t_pad)[None, :] >= T,
                         jnp.float32(-1e30), ap_p)

    cparams = pltpu.CompilerParams(dimension_semantics=("parallel",),
                                   vmem_limit_bytes=vmem_limit)

    # --- kernel 1: fused QKV projection, tiled (parallel) over rows -------- #
    qkv = pl.pallas_call(
        _qkv_proj_kernel,
        out_shape=jax.ShapeDtypeStruct((t_pad, 3 * d_h_p), compute_dtype),
        grid_spec=pltpu.PrefetchScalarGridSpec(
            num_scalar_prefetch=0,
            grid=(n_row,),
            in_specs=[
                pl.BlockSpec((tq, d_in_p), lambda i: (i, 0)),
                pl.BlockSpec((3 * d_h_p, d_in_p), lambda i: (0, 0)),
            ],
            out_specs=pl.BlockSpec((tq, 3 * d_h_p), lambda i: (i, 0)),
        ),
        compiler_params=cparams,
    )(x_p, w_qkv)

    # --- kernel 2: attention + output projection, tiled over query rows ---- #
    # The qkv array is passed three times with different BlockSpecs: a (tq,Dh)
    # Q tile that marches with the grid, and K / V as full VMEM-resident blocks
    # (constant block index -> fetched once, no re-DMA per step).
    y_p, attn_p = pl.pallas_call(
        _attention_kernel,
        out_shape=(jax.ShapeDtypeStruct((t_pad, d_out_p), jnp.float32),
                   jax.ShapeDtypeStruct((t_pad, t_pad), jnp.float32)),
        grid_spec=pltpu.PrefetchScalarGridSpec(
            num_scalar_prefetch=0,
            grid=(n_row,),
            in_specs=[
                pl.BlockSpec((tq, d_h_p), lambda i: (i, 0)),       # Q tile
                pl.BlockSpec((t_pad, d_h_p), lambda i: (0, 1)),    # K (full)
                pl.BlockSpec((t_pad, d_h_p), lambda i: (0, 2)),    # V (full)
                pl.BlockSpec((tq, t_pad), lambda i: (i, 0)),       # AP tile
                pl.BlockSpec((d_out_p, d_h_p), lambda i: (0, 0)),  # Wo
            ],
            out_specs=(
                pl.BlockSpec((tq, d_out_p), lambda i: (i, 0)),     # y tile
                pl.BlockSpec((tq, t_pad), lambda i: (i, 0)),       # attn tile
            ),
        ),
        compiler_params=cparams,
    )(qkv, qkv, qkv, ap_p, wo_p)

    return y_p[:T, :d_out], attn_p[:T, :T]


# ----------------------------- reference ---------------------------------- #

def _reference(x, wq, wk, wv, wo, freq=10000.0, d=1024.0):
    q, k, v = x @ wq.T, x @ wk.T, x @ wv.T
    s = q @ k.T
    t = s.shape[0]
    pos = jnp.arange(t, dtype=jnp.float32)[:, None]
    i = jnp.arange(t // 2, dtype=jnp.float32)[None, :]
    ang = pos / (freq ** (2.0 * i / d))
    ap = jnp.zeros((t, t), jnp.float32)
    ap = ap.at[:, 0:2 * (t // 2):2].set(jnp.sin(ang))
    ap = ap.at[:, 1:2 * (t // 2):2].set(jnp.cos(ang))
    p = jax.nn.softmax(s + ap, axis=-1)
    return (p @ v) @ wo.T, p


if __name__ == "__main__":
    # Small shapes consistent with the forward: x is (T, input_size), heads=1.
    T, input_size, output_size, heads = 8, 32, 32, 1
    d_h = output_size // heads

    key = jax.random.PRNGKey(0)
    kx, kq, kk, kv, ko = jax.random.split(key, 5)

    scale = 1.0 / jnp.sqrt(jnp.float32(input_size))
    x = jax.random.normal(kx, (T, input_size), jnp.float32)
    # nn.Linear weight layout: (out_features, in_features), bias=False
    wq = jax.random.uniform(kq, (d_h, input_size), jnp.float32, -scale, scale)
    wk = jax.random.uniform(kk, (d_h, input_size), jnp.float32, -scale, scale)
    wv = jax.random.uniform(kv, (d_h, input_size), jnp.float32, -scale, scale)
    wo = jax.random.uniform(ko, (input_size, output_size), jnp.float32, -scale, scale)

    y, attn = self_attention(x, wq, wk, wv, wo)
    jax.block_until_ready((y, attn))

    y_ref, attn_ref = _reference(x, wq, wk, wv, wo)
    assert y.shape == (T, input_size) and attn.shape == (T, T)
    assert jnp.allclose(y, y_ref, atol=1e-5, rtol=1e-5), "output mismatch"
    assert jnp.allclose(attn, attn_ref, atol=1e-5, rtol=1e-5), "attention mismatch"

    # bf16 MXU path (f32 accumulation) — looser tolerance.
    y16, attn16 = self_attention(x, wq, wk, wv, wo, compute_dtype=jnp.bfloat16)
    jax.block_until_ready((y16, attn16))
    assert jnp.allclose(y16, y_ref, atol=1e-1, rtol=1e-1), "bf16 output mismatch"
    assert jnp.allclose(attn16, attn_ref, atol=1e-1, rtol=1e-1), "bf16 attention mismatch"

    print("KERNEL_OK")
</pallas_src>

<mosaic_0001>
module attributes {stable_mosaic.version = 11 : i64} {
  func.func @_qkv_proj_kernel(%arg0: i32, %arg1: memref<8x128xf32, #tpu.memory_space<vmem>>, %arg2: memref<384x128xf32, #tpu.memory_space<vmem>>, %arg3: memref<8x384xf32, #tpu.memory_space<vmem>>) attributes {dimension_semantics = [#tpu.dimension_semantics<parallel>], iteration_bounds = array<i64: 1>, scalar_prefetch = 0 : i64, scratch_operands = 0 : i64, tpu.core_type = #tpu.core_type<tc>, window_params = [{transform_indices = @transform_0, window_bounds = array<i64: 8, 128>}, {pipeline_mode = #tpu.pipeline_mode<synchronous>, transform_indices = @transform_1, window_bounds = array<i64: 384, 128>}, {transform_indices = @transform_2, window_bounds = array<i64: 8, 384>}]} {
    %c0 = arith.constant 0 : index
    %c0_0 = arith.constant 0 : index
    %0 = vector.load %arg1[%c0, %c0_0] : memref<8x128xf32, #tpu.memory_space<vmem>>, vector<8x128xf32>
    %c0_1 = arith.constant 0 : index
    %c0_2 = arith.constant 0 : index
    %1 = vector.load %arg2[%c0_1, %c0_2] : memref<384x128xf32, #tpu.memory_space<vmem>>, vector<384x128xf32>
    %cst = arith.constant dense<0.000000e+00> : vector<8x384xf32>
    %2 = tpu.matmul %0, %1, %cst {dimension_numbers = #tpu.dot_dimension_numbers<[1], [1], [0], [0], [0, 0, 1, 0], [], []>} : vector<8x128xf32>, vector<384x128xf32>, vector<8x384xf32> -> vector<8x384xf32>
    %c0_3 = arith.constant 0 : index
    %c0_4 = arith.constant 0 : index
    %3 = vector.load %arg3[%c0_3, %c0_4] : memref<8x384xf32, #tpu.memory_space<vmem>>, vector<8x384xf32>
    tpu.vector_store %arg3[%c0_3, %c0_4], %2 {strides = array<i32>} : memref<8x384xf32, #tpu.memory_space<vmem>>, vector<8x384xf32>,
    return
  }
  func.func @transform_0(%arg0: i32) -> (i32, i32) {
    %c0_i32 = arith.constant 0 : i32
    %c0_i32_0 = arith.constant 0 : i32
    return %arg0, %c0_i32 : i32, i32
  }
  func.func @transform_1(%arg0: i32) -> (i32, i32) {
    %c0_i32 = arith.constant 0 : i32
    %c0_i32_0 = arith.constant 0 : i32
    %c0_i32_1 = arith.constant 0 : i32
    return %c0_i32, %c0_i32_0 : i32, i32
  }
  func.func @transform_2(%arg0: i32) -> (i32, i32) {
    %c0_i32 = arith.constant 0 : i32
    %c0_i32_0 = arith.constant 0 : i32
    return %arg0, %c0_i32 : i32, i32
  }
}

</mosaic_0001>

<bundles_post_ra>
// kernel: tpu_custom_call.1
= control target key start
LH: loop header
LB: loop body
LE: loop exit
PB: predicated region body
PF: predicated region fallthrough
CT: control target
= control target key end

     0   :  { %7 = vsyncpa [#allocation3], 0  ;;  %s284_s0 = inlined_call_operand.hbm [shape: f32[8,128], index: 0, kind: input, shape index: {}]   ;;  %s285_s1 = inlined_call_operand.hbm [shape: f32[384,128], index: 1, kind: input, shape index: {}]   ;;  %s286_s2 = inlined_call_operand.hbm [shape: f32[8,384], index: 2, kind: output, shape index: {}]  }
   0x1   :  { %8 = vsyncpa [#allocation6], 0 }
   0x2   :  { %9 = vsyncpa [#allocation4], 0  ;;  %s15_s11 = sshll.u32 %s284_s0, 4  ;;  %s255_s12 = smov [#allocation2]   ;;  %s16_s11 = int_to_ptr.hbm [resolvable:$true] %s15_s11 }
   0x3   :  { %s17_s13 = sshll.u32 %s255_s12, 4  ;;  %s25_s16 = sshll.u32 %s285_s1, 4  ;;  %s18_s13 = int_to_ptr.vmem [resolvable:$true] %s17_s13  ;;  %s26_s16 = int_to_ptr.hbm [resolvable:$true] %s25_s16 }
   0x4   :  { %20 = dma.hbm_to_vmem [thread:$0]  %s16_s11, 128, %s18_s13, [#allocation3]  }
   0x5   :  { %s256_s17 = smov [#allocation5]   ;;  %s257_s19 = smov 128  }
   0x6   :  { %s27_s18 = sshll.u32 %s256_s17, 4  ;;  %s258_s20 = smov 8   ;;  %s28_s18 = int_to_ptr.vmem [resolvable:$true] %s27_s18 }
   0x7   :  { %33 = dma.hbm_to_vmem [thread:$0]  %s26_s16, 6144, %s28_s18, [#allocation6], %s257_s19, %s257_s19, %s258_s20  }
   0x8   :  { %249 = dma.done.wait [#allocation3], 128  }
   0x9   :  { %250 = vsyncadd [#allocation3], 4294967168 }
   0xa   :  { %251 = dma.done.wait [#allocation6], 6144  }
   0xb   :  { %252 = vsyncadd [#allocation6], 4294961152  ;;  %v90_v0 = vld [vmem:[#allocation5 + $0x178] sm:$0xff]  ;;  %v89_v3 = vld [vmem:[#allocation5 + $0x170] sm:$0xff]  ;;  %s259_s0 = smov [#allocation7]   ;;  %s161_s23 = sshll.u32 %s286_s2, 4  ;;  %s162_s23 = int_to_ptr.hbm [resolvable:$true] %s161_s23 }
   0xc   :  { %v58_v1 = vld [vmem:[#allocation5 + $0x78] sm:$0xff]  ;;  %131 = vmatpush.xpose.msra.mxu2 %v90_v0  ;;  %v57_v4 = vld [vmem:[#allocation5 + $0x70] sm:$0xff]  ;;  %v88_v6 = vld [vmem:[#allocation5 + $0x168] sm:$0xff]  ;;  %s159_s1 = sshll.u32 %s259_s0, 4  ;;  %s160_s1 = int_to_ptr.vmem [resolvable:$true] %s159_s1 }
   0xd   :  { %91 = vmatpush.xpose.msra.mxu0 %v58_v1  ;;  %v74_v2 = vld [vmem:[#allocation5 + $0xf8] sm:$0xff]  ;;  %v73_v5 = vld [vmem:[#allocation5 + $0xf0] sm:$0xff]  ;;  %v56_v7 = vld [vmem:[#allocation5 + $0x68] sm:$0xff] }
   0xe   :  { %111 = vmatpush.xpose.msra.mxu1 %v74_v2  ;;  %v72_v8 = vld [vmem:[#allocation5 + $0xe8] sm:$0xff]  ;;  %v87_v9 = vld [vmem:[#allocation5 + $0x160] sm:$0xff]  ;;  %v86_v12 = vld [vmem:[#allocation5 + $0x158] sm:$0xff] }
   0xf   :  { %v55_v10 = vld [vmem:[#allocation5 + $0x60] sm:$0xff]  ;;  %v54_v13 = vld [vmem:[#allocation5 + $0x58] sm:$0xff]  ;;  %v85_v15 = vld [vmem:[#allocation5 + $0x150] sm:$0xff] }
  0x10   :  { %132 = vmatpush.xpose.msra.mxu2 %v89_v3  ;;  %v71_v11 = vld [vmem:[#allocation5 + $0xe0] sm:$0xff]  ;;  %v70_v14 = vld [vmem:[#allocation5 + $0xd8] sm:$0xff]  ;;  %v53_v16 = vld [vmem:[#allocation5 + $0x50] sm:$0xff] }
  0x11   :  { %92 = vmatpush.xpose.msra.mxu0 %v57_v4  ;;  %v69_v17 = vld [vmem:[#allocation5 + $0xd0] sm:$0xff]  ;;  %v84_v18 = vld [vmem:[#allocation5 + $0x148] sm:$0xff]  ;;  %v83_v21 = vld [vmem:[#allocation5 + $0x140] sm:$0xff] }
  0x12   :  { %112 = vmatpush.xpose.msra.mxu1 %v73_v5  ;;  %v52_v19 = vld [vmem:[#allocation5 + $0x48] sm:$0xff]  ;;  %v51_v22 = vld [vmem:[#allocation5 + $0x40] sm:$0xff]  ;;  %v82_v24 = vld [vmem:[#allocation5 + $0x138] sm:$0xff] }
  0x13   :  { %v68_v20 = vld [vmem:[#allocation5 + $0xc8] sm:$0xff]  ;;  %v67_v23 = vld [vmem:[#allocation5 + $0xc0] sm:$0xff]  ;;  %v50_v25 = vld [vmem:[#allocation5 + $0x38] sm:$0xff] }
  0x14   :  { %133 = vmatpush.xpose.msra.mxu2 %v88_v6  ;;  %v66_v26 = vld [vmem:[#allocation5 + $0xb8] sm:$0xff]  ;;  %v81_v27 = vld [vmem:[#allocation5 + $0x130] sm:$0xff]  ;;  %v80_v30 = vld [vmem:[#allocation5 + $0x128] sm:$0xff] }
  0x15   :  { %93 = vmatpush.xpose.msra.mxu0 %v56_v7  ;;  %v49_v28 = vld [vmem:[#allocation5 + $0x30] sm:$0xff]  ;;  %v48_v31 = vld [vmem:[#allocation5 + $0x28] sm:$0xff]  ;;  %v79_v33 = vld [vmem:[#allocation5 + $0x120] sm:$0xff] }
  0x16   :  { %113 = vmatpush.xpose.msra.mxu1 %v72_v8  ;;  %v65_v29 = vld [vmem:[#allocation5 + $0xb0] sm:$0xff]  ;;  %v64_v32 = vld [vmem:[#allocation5 + $0xa8] sm:$0xff]  ;;  %v47_v34 = vld [vmem:[#allocation5 + $0x20] sm:$0xff] }
  0x17   :  { %v63_v35 = vld [vmem:[#allocation5 + $0xa0] sm:$0xff]  ;;  %v78_v36 = vld [vmem:[#allocation5 + $0x118] sm:$0xff]  ;;  %v77_v39 = vld [vmem:[#allocation5 + $0x110] sm:$0xff] }
  0x18   :  { %134 = vmatpush.xpose.msra.mxu2 %v87_v9  ;;  %v46_v37 = vld [vmem:[#allocation5 + $0x18] sm:$0xff]  ;;  %v45_v40 = vld [vmem:[#allocation5 + $0x10] sm:$0xff]  ;;  %v76_v42 = vld [vmem:[#allocation5 + $0x108] sm:$0xff] }
  0x19   :  { %94 = vmatpush.xpose.msra.mxu0 %v55_v10  ;;  %v62_v38 = vld [vmem:[#allocation5 + $0x98] sm:$0xff]  ;;  %v61_v41 = vld [vmem:[#allocation5 + $0x90] sm:$0xff]  ;;  %v44_v43 = vld [vmem:[#allocation5 + $0x8] sm:$0xff] }
  0x1a   :  { %114 = vmatpush.xpose.msra.mxu1 %v71_v11  ;;  %v60_v44 = vld [vmem:[#allocation5 + $0x88] sm:$0xff]  ;;  %v75_v45 = vld [vmem:[#allocation5 + $0x100] sm:$0xff]  ;;  %v42_v48 = vld [vmem:[#allocation2] sm:$0xff] }
  0x1b   :  { %v43_v46 = vld [vmem:[#allocation5] sm:$0xff] }
  0x1c   :  { %135 = vmatpush.xpose.msra.mxu2 %v86_v12  ;;  %v59_v47 = vld [vmem:[#allocation5 + $0x80] sm:$0xff] }
  0x1d   :  { %95 = vmatpush.xpose.msra.mxu0 %v54_v13 }
  0x1e   :  { %115 = vmatpush.xpose.msra.mxu1 %v70_v14 }
  0x20   :  { %136 = vmatpush.xpose.msra.mxu2 %v85_v15 }
  0x21   :  { %96 = vmatpush.xpose.msra.mxu0 %v53_v16 }
  0x22   :  { %116 = vmatpush.xpose.msra.mxu1 %v69_v17 }
  0x24   :  { %137 = vmatpush.xpose.msra.mxu2 %v84_v18 }
  0x25   :  { %97 = vmatpush.xpose.msra.mxu0 %v52_v19 }
  0x26   :  { %117 = vmatpush.xpose.msra.mxu1 %v68_v20 }
  0x28   :  { %138 = vmatpush.xpose.msra.mxu2 %v83_v21 }
  0x29   :  { %98 = vmatpush.xpose.msra.mxu0 %v51_v22 }
  0x2a   :  { %118 = vmatpush.xpose.msra.mxu1 %v67_v23 }
  0x2c   :  { %139 = vmatpush.xpose.msra.mxu2 %v82_v24 }
  0x2d   :  { %99 = vmatpush.xpose.msra.mxu0 %v50_v25 }
  0x2e   :  { %119 = vmatpush.xpose.msra.mxu1 %v66_v26 }
  0x30   :  { %140 = vmatpush.xpose.msra.mxu2 %v81_v27 }
  0x31   :  { %100 = vmatpush.xpose.msra.mxu0 %v49_v28 }
  0x32   :  { %120 = vmatpush.xpose.msra.mxu1 %v65_v29 }
  0x34   :  { %141 = vmatpush.xpose.msra.mxu2 %v80_v30 }
  0x35   :  { %101 = vmatpush.xpose.msra.mxu0 %v48_v31 }
  0x36   :  { %121 = vmatpush.xpose.msra.mxu1 %v64_v32 }
  0x38   :  { %142 = vmatpush.xpose.msra.mxu2 %v79_v33 }
  0x39   :  { %102 = vmatpush.xpose.msra.mxu0 %v47_v34 }
  0x3a   :  { %122 = vmatpush.xpose.msra.mxu1 %v63_v35 }
  0x3c   :  { %143 = vmatpush.xpose.msra.mxu2 %v78_v36 }
  0x3d   :  { %103 = vmatpush.xpose.msra.mxu0 %v46_v37 }
  0x3e   :  { %123 = vmatpush.xpose.msra.mxu1 %v62_v38 }
  0x40   :  { %144 = vmatpush.xpose.msra.mxu2 %v77_v39 }
  0x41   :  { %104 = vmatpush.xpose.msra.mxu0 %v45_v40 }
  0x42   :  { %124 = vmatpush.xpose.msra.mxu1 %v61_v41 }
  0x44   :  { %145 = vmatpush.xpose.msra.mxu2 %v76_v42 }
  0x45   :  { %105 = vmatpush.xpose.msra.mxu0 %v44_v43 }
  0x46   :  { %125 = vmatpush.xpose.msra.mxu1 %v60_v44 }
  0x48   :  { %146 = vmatpush.xpose.msra.mxu2 %v75_v45 }
  0x49   :  { %106 = vmatpush.xpose.msra.mxu0 %v43_v46 }
  0x4a   :  { %126 = vmatpush.xpose.msra.mxu1 %v59_v47 }
  0x4b   :  { %147 = vmatmul.f32.vlgmr.msra.gmra.mxu2 %v42_v48 }
  0x4c   :  { %107 = vmatmul.f32.vlgmr.msra.gmra.mxu0 %v42_v48 }
  0x4d   :  { %127 = vmatmul.f32.vlgmr.msra.gmra.mxu1 %v42_v48 }
  0xc9   :  { %v108_v49 = vpop.f32.mrf.mxu0 }
  0xca   :  { %151 = vst [vmem:[#allocation7] sm:$0xff] %v108_v49  ;;  %v128_v50 = vpop.f32.mrf.mxu1 }
  0xcb   :  { %152 = vst [vmem:[#allocation7 + $0x8] sm:$0xff] %v128_v50 }
  0xce   :  { %v148_v51 = vpop.f32.mrf.mxu2 }
  0xcf   :  { %153 = vst [vmem:[#allocation7 + $0x10] sm:$0xff] %v148_v51 }
  0xd0   :  { %164 = dma.vmem_to_hbm [thread:$0]  %s160_s1, 384, %s162_s23, [#allocation4]  }
  0xd1   :  { %253 = dma.done.wait [#allocation4], 384  }
  0xd2   :  { %254 = vsyncadd [#allocation4], 4294966912 }
  0xd3   :  { %169 = vsyncpa [#allocation3], 1 }
  0xd4   :  { %170 = vsyncpa [#allocation6], 1 }
  0xd5   :  { %171 = vsyncpa [#allocation4], 1 }

</bundles_post_ra>
